<compile_context>
chip_gen: v6e
topology: v6e:2x2x1
jax: 0.10.0
libtpu: 0.0.40
codegen_flags: <defaults>
</compile_context>

<pallas_src>
import functools

import jax
import jax.numpy as jnp
from jax.experimental import pallas as pl
from jax.experimental.pallas import tpu as pltpu


def _round_up(x, m):
    return ((x + m - 1) // m) * m


def _positional_encoding(seq_len, model_dim):
    """(S, D) sinusoidal PE identical to the PyTorch module's positional_embed:
    even dim i -> sin(pos / 10000**(i/D)); odd dim i -> cos(pos / 10000**((i-1)/D))."""
    pos = jnp.arange(seq_len, dtype=jnp.float32)[:, None]          # (S, 1)
    dim = jnp.arange(model_dim)
    dim_even = ((dim // 2) * 2).astype(jnp.float32)
    angle = pos / jnp.power(jnp.float32(10000.0), dim_even / jnp.float32(model_dim))
    return jnp.where(dim % 2 == 0, jnp.sin(angle), jnp.cos(angle)).astype(jnp.float32)


def _embed_kernel(ids_ref,                                  # scalar prefetch (SMEM), (B*S_pad,)
                  tok_hbm, segtbl_ref, segid_ref, pe_ref,   # inputs
                  out_ref,                                  # output block (tile_rows, D_pad)
                  tok_buf, sem,                             # scratch
                  *, tile_rows, s_pad):
    j = pl.program_id(0)                 # sequence-tile index
    b = pl.program_id(1)                 # batch index
    base = pl.multiple_of(b * s_pad + j * tile_rows, tile_rows)

    # ---- issue all token-row gathers for this tile (one (1, D) DMA per row) ----
    def issue_row(r, carry):
        tok_id = ids_ref[base + r]
        pltpu.make_async_copy(tok_hbm.at[pl.ds(tok_id, 1), :],
                              tok_buf.at[pl.ds(r, 1), :],
                              sem.at[0]).start()
        return carry

    jax.lax.fori_loop(0, tile_rows, issue_row, 0, unroll=8)

    # ---- overlap with the in-flight DMAs: segment select + PE add -------------
    seg = segid_ref[...]                 # (tile_rows, 1) int32
    st = segtbl_ref[...]                 # (3, D_pad) f32, resident in VMEM
    seg_plus_pe = jnp.where(seg == 0, st[0:1, :],
                            jnp.where(seg == 1, st[1:2, :], st[2:3, :])) + pe_ref[...]

    # ---- one consolidated wait: every issued copy is (1, D_pad) f32, so a
    #      single (tile_rows, D_pad) placeholder matches the total bytes. -------
    pltpu.make_async_copy(tok_hbm.at[pl.ds(0, tile_rows), :], tok_buf,
                          sem.at[0]).wait()

    # ---- dense lane-aligned add + single unmasked store ------------------------
    out_ref[...] = tok_buf[...] + seg_plus_pe


def _choose_tile_rows(seq_len, d_pad, budget_bytes=8 * 1024 * 1024):
    """~5 live f32 (tile_rows, D_pad) buffers: 2x PE, 2x out (double-buffered), tok_buf."""
    by_vmem = max(8, (budget_bytes // (5 * d_pad * 4)) // 8 * 8)
    return max(8, min(512, _round_up(seq_len, 8), by_vmem))


def embed_layer_forward(input_ids, segment_label, token_table, segment_table,
                        *, tile_rows=None):
    """Pallas equivalent of EmbedLayer.forward.

    input_ids:      (B, S) int32
    segment_label:  (B, S) int32 (values in {0, 1, 2})
    token_table:    (vocab_size, model_dim) float32
    segment_table:  (3, model_dim) float32
    returns:        (B, S, model_dim) float32
    """
    b, s = input_ids.shape
    v, d = token_table.shape

    d_pad = _round_up(d, 128)
    if tile_rows is None:
        tile_rows = _choose_tile_rows(s, d_pad)
    tile_rows = max(8, _round_up(tile_rows, 8))
    s_pad = _round_up(s, tile_rows)
    num_seq_tiles = s_pad // tile_rows

    # Flat token ids -> SMEM (scalar prefetch) to drive the per-row HBM gather.
    ids = jnp.pad(input_ids.astype(jnp.int32), ((0, 0), (0, s_pad - s))).reshape(-1)
    # Segment ids -> (B, S_pad, 1) int32 VMEM blocks (no per-row DMAs needed).
    segid = jnp.pad(segment_label.astype(jnp.int32),
                    ((0, 0), (0, s_pad - s))).reshape(b, s_pad, 1)

    # Pad tables / PE along D to a multiple of 128 (lane-dense rows + stores).
    # Pad vocab rows up to tile_rows so the consolidated-wait placeholder
    # descriptor is always in-bounds.
    v_pad = max(v, tile_rows)
    tok_tbl = jnp.pad(token_table.astype(jnp.float32),
                      ((0, v_pad - v), (0, d_pad - d)))
    seg_tbl = jnp.pad(segment_table.astype(jnp.float32), ((0, 0), (0, d_pad - d)))
    pe = jnp.pad(_positional_encoding(s_pad, d), ((0, 0), (0, d_pad - d)))   # (S_pad, D_pad)

    grid_spec = pltpu.PrefetchScalarGridSpec(
        num_scalar_prefetch=1,
        grid=(num_seq_tiles, b),                 # batch innermost -> PE block reused
        in_specs=[
            pl.BlockSpec(memory_space=pl.ANY),                                  # token table (HBM)
            pl.BlockSpec((3, d_pad), lambda j, bb, ids_s: (0, 0)),              # segment table (resident)
            pl.BlockSpec((None, tile_rows, 1), lambda j, bb, ids_s: (bb, j, 0)),  # segment ids
            pl.BlockSpec((tile_rows, d_pad), lambda j, bb, ids_s: (j, 0)),      # PE tile (wraps over batch)
        ],
        out_specs=pl.BlockSpec((None, tile_rows, d_pad),
                               lambda j, bb, ids_s: (bb, j, 0)),
        scratch_shapes=[
            pltpu.VMEM((tile_rows, d_pad), jnp.float32),   # gathered token rows
            pltpu.SemaphoreType.DMA((1,)),                 # token-gather completion
        ],
    )

    out = pl.pallas_call(
        functools.partial(_embed_kernel, tile_rows=tile_rows, s_pad=s_pad),
        out_shape=jax.ShapeDtypeStruct((b, s_pad, d_pad), jnp.float32),
        grid_spec=grid_spec,
        compiler_params=pltpu.CompilerParams(
            dimension_semantics=("parallel", "parallel")),   # megacore sharding on v7x
    )(ids, tok_tbl, seg_tbl, segid, pe)

    return out[:, :s, :d]


def _reference_forward(input_ids, segment_label, token_table, segment_table):
    """Pure-JAX reference mirroring the PyTorch module."""
    tok = token_table[input_ids]                 # (B, S, D)
    seg = segment_table[segment_label]           # (B, S, D)
    s = input_ids.shape[1]
    d = token_table.shape[1]
    pe = _positional_encoding(s, d)              # (S, D)
    return tok + seg + pe[None, :, :]


if __name__ == "__main__":
    vocab_size = 32
    model_dim = 32
    batch = 2
    seq = 8

    key = jax.random.PRNGKey(0)
    k_tok, k_seg, k_ids, k_lbl = jax.random.split(key, 4)

    # nn.Embedding default init ~ N(0,1); padding_idx=0 zeroes row 0.
    token_table = jax.random.normal(k_tok, (vocab_size, model_dim), jnp.float32)
    token_table = token_table.at[0].set(0.0)
    segment_table = jax.random.normal(k_seg, (3, model_dim), jnp.float32)
    segment_table = segment_table.at[0].set(0.0)

    input_ids = jax.random.randint(k_ids, (batch, seq), 0, vocab_size, jnp.int32)
    segment_label = jax.random.randint(k_lbl, (batch, seq), 0, 3, jnp.int32)

    out = embed_layer_forward(input_ids, segment_label, token_table, segment_table)
    out = jax.block_until_ready(out)

    ref = _reference_forward(input_ids, segment_label, token_table, segment_table)
    assert out.shape == (batch, seq, model_dim)
    assert jnp.allclose(out, ref, rtol=1e-5, atol=1e-5), "mismatch vs reference"

    print("KERNEL_OK")
</pallas_src>

<mosaic_0001>
module attributes {stable_mosaic.version = 11 : i64} {
  func.func @_embed_kernel(%arg0: i32, %arg1: i32, %arg2: memref<16xi32, #tpu.memory_space<smem>>, %arg3: memref<32x128xf32, #tpu.memory_space<any>>, %arg4: memref<3x128xf32, #tpu.memory_space<vmem>>, %arg5: memref<1x8x1xi32, #tpu.memory_space<vmem>>, %arg6: memref<8x128xf32, #tpu.memory_space<vmem>>, %arg7: memref<1x8x128xf32, #tpu.memory_space<vmem>>, %arg8: memref<8x128xf32, #tpu.memory_space<vmem>>, %arg9: memref<1x!tpu.dma_semaphore, #tpu.memory_space<semaphore_mem>>) attributes {dimension_semantics = [#tpu.dimension_semantics<parallel>, #tpu.dimension_semantics<parallel>], iteration_bounds = array<i64: 1, 2>, scalar_prefetch = 1 : i64, scratch_operands = 2 : i64, tpu.core_type = #tpu.core_type<tc>, window_params = [{}, {pipeline_mode = #tpu.pipeline_mode<synchronous>, transform_indices = @transform_1, window_bounds = array<i64: 3, 128>}, {transform_indices = @transform_2, window_bounds = array<i64: 1, 8, 1>}, {transform_indices = @transform_3, window_bounds = array<i64: 8, 128>}, {transform_indices = @transform_4, window_bounds = array<i64: 1, 8, 128>}]} {
    %c8_i32 = arith.constant 8 : i32
    %0 = arith.muli %arg1, %c8_i32 : i32
    %c8_i32_0 = arith.constant 8 : i32
    %1 = arith.muli %arg0, %c8_i32_0 : i32
    %2 = arith.addi %0, %1 : i32
    %3 = tpu.assume_multiple %2, 8 : i32
    %c0_i32 = arith.constant 0 : i32
    %4 = arith.addi %3, %c0_i32 : i32
    %5 = arith.index_cast %4 : i32 to index
    %6 = memref.load %arg2[%5] : memref<16xi32, #tpu.memory_space<smem>>
    %c0_i32_1 = arith.constant 0 : i32
    %c0_i32_2 = arith.constant 0 : i32
    %7 = tpu.memref_slice %arg3[%6, %c0_i32_2] : memref<32x128xf32, #tpu.memory_space<any>> -> memref<1x128xf32, #tpu.memory_space<any>>
    %c0_i32_3 = arith.constant 0 : i32
    %8 = tpu.memref_slice %arg8[%c0_i32, %c0_i32_3] : memref<8x128xf32, #tpu.memory_space<vmem>> -> memref<1x128xf32, #tpu.memory_space<vmem>>
    %9 = tpu.memref_slice %arg9[%c0_i32_1] : memref<1x!tpu.dma_semaphore, #tpu.memory_space<semaphore_mem>> -> memref<1x!tpu.dma_semaphore, #tpu.memory_space<semaphore_mem>>
    %10 = tpu.memref_squeeze %9 : memref<1x!tpu.dma_semaphore, #tpu.memory_space<semaphore_mem>> -> memref<!tpu.dma_semaphore, #tpu.memory_space<semaphore_mem>>
    tpu.enqueue_dma source(%7 : memref<1x128xf32, #tpu.memory_space<any>>) target(%8 : memref<1x128xf32, #tpu.memory_space<vmem>>) target_semaphore(%10 : memref<!tpu.dma_semaphore, #tpu.memory_space<semaphore_mem>>)
    %c1_i32 = arith.constant 1 : i32
    %11 = arith.addi %3, %c1_i32 : i32
    %12 = arith.index_cast %11 : i32 to index
    %13 = memref.load %arg2[%12] : memref<16xi32, #tpu.memory_space<smem>>
    %c0_i32_4 = arith.constant 0 : i32
    %c0_i32_5 = arith.constant 0 : i32
    %14 = tpu.memref_slice %arg3[%13, %c0_i32_5] : memref<32x128xf32, #tpu.memory_space<any>> -> memref<1x128xf32, #tpu.memory_space<any>>
    %c0_i32_6 = arith.constant 0 : i32
    %15 = tpu.memref_slice %arg8[%c1_i32, %c0_i32_6] : memref<8x128xf32, #tpu.memory_space<vmem>> -> memref<1x128xf32, #tpu.memory_space<vmem>>
    %16 = tpu.memref_slice %arg9[%c0_i32_4] : memref<1x!tpu.dma_semaphore, #tpu.memory_space<semaphore_mem>> -> memref<1x!tpu.dma_semaphore, #tpu.memory_space<semaphore_mem>>
    %17 = tpu.memref_squeeze %16 : memref<1x!tpu.dma_semaphore, #tpu.memory_space<semaphore_mem>> -> memref<!tpu.dma_semaphore, #tpu.memory_space<semaphore_mem>>
    tpu.enqueue_dma source(%14 : memref<1x128xf32, #tpu.memory_space<any>>) target(%15 : memref<1x128xf32, #tpu.memory_space<vmem>>) target_semaphore(%17 : memref<!tpu.dma_semaphore, #tpu.memory_space<semaphore_mem>>)
    %c2_i32 = arith.constant 2 : i32
    %18 = arith.addi %3, %c2_i32 : i32
    %19 = arith.index_cast %18 : i32 to index
    %20 = memref.load %arg2[%19] : memref<16xi32, #tpu.memory_space<smem>>
    %c0_i32_7 = arith.constant 0 : i32
    %c0_i32_8 = arith.constant 0 : i32
    %21 = tpu.memref_slice %arg3[%20, %c0_i32_8] : memref<32x128xf32, #tpu.memory_space<any>> -> memref<1x128xf32, #tpu.memory_space<any>>
    %c0_i32_9 = arith.constant 0 : i32
    %22 = tpu.memref_slice %arg8[%c2_i32, %c0_i32_9] : memref<8x128xf32, #tpu.memory_space<vmem>> -> memref<1x128xf32, #tpu.memory_space<vmem>>
    %23 = tpu.memref_slice %arg9[%c0_i32_7] : memref<1x!tpu.dma_semaphore, #tpu.memory_space<semaphore_mem>> -> memref<1x!tpu.dma_semaphore, #tpu.memory_space<semaphore_mem>>
    %24 = tpu.memref_squeeze %23 : memref<1x!tpu.dma_semaphore, #tpu.memory_space<semaphore_mem>> -> memref<!tpu.dma_semaphore, #tpu.memory_space<semaphore_mem>>
    tpu.enqueue_dma source(%21 : memref<1x128xf32, #tpu.memory_space<any>>) target(%22 : memref<1x128xf32, #tpu.memory_space<vmem>>) target_semaphore(%24 : memref<!tpu.dma_semaphore, #tpu.memory_space<semaphore_mem>>)
    %c3_i32 = arith.constant 3 : i32
    %25 = arith.addi %3, %c3_i32 : i32
    %26 = arith.index_cast %25 : i32 to index
    %27 = memref.load %arg2[%26] : memref<16xi32, #tpu.memory_space<smem>>
    %c0_i32_10 = arith.constant 0 : i32
    %c0_i32_11 = arith.constant 0 : i32
    %28 = tpu.memref_slice %arg3[%27, %c0_i32_11] : memref<32x128xf32, #tpu.memory_space<any>> -> memref<1x128xf32, #tpu.memory_space<any>>
    %c0_i32_12 = arith.constant 0 : i32
    %29 = tpu.memref_slice %arg8[%c3_i32, %c0_i32_12] : memref<8x128xf32, #tpu.memory_space<vmem>> -> memref<1x128xf32, #tpu.memory_space<vmem>>
    %30 = tpu.memref_slice %arg9[%c0_i32_10] : memref<1x!tpu.dma_semaphore, #tpu.memory_space<semaphore_mem>> -> memref<1x!tpu.dma_semaphore, #tpu.memory_space<semaphore_mem>>
    %31 = tpu.memref_squeeze %30 : memref<1x!tpu.dma_semaphore, #tpu.memory_space<semaphore_mem>> -> memref<!tpu.dma_semaphore, #tpu.memory_space<semaphore_mem>>
    tpu.enqueue_dma source(%28 : memref<1x128xf32, #tpu.memory_space<any>>) target(%29 : memref<1x128xf32, #tpu.memory_space<vmem>>) target_semaphore(%31 : memref<!tpu.dma_semaphore, #tpu.memory_space<semaphore_mem>>)
    %c4_i32 = arith.constant 4 : i32
    %32 = arith.addi %3, %c4_i32 : i32
    %33 = arith.index_cast %32 : i32 to index
    %34 = memref.load %arg2[%33] : memref<16xi32, #tpu.memory_space<smem>>
    %c0_i32_13 = arith.constant 0 : i32
    %c0_i32_14 = arith.constant 0 : i32
    %35 = tpu.memref_slice %arg3[%34, %c0_i32_14] : memref<32x128xf32, #tpu.memory_space<any>> -> memref<1x128xf32, #tpu.memory_space<any>>
    %c0_i32_15 = arith.constant 0 : i32
    %36 = tpu.memref_slice %arg8[%c4_i32, %c0_i32_15] : memref<8x128xf32, #tpu.memory_space<vmem>> -> memref<1x128xf32, #tpu.memory_space<vmem>>
    %37 = tpu.memref_slice %arg9[%c0_i32_13] : memref<1x!tpu.dma_semaphore, #tpu.memory_space<semaphore_mem>> -> memref<1x!tpu.dma_semaphore, #tpu.memory_space<semaphore_mem>>
    %38 = tpu.memref_squeeze %37 : memref<1x!tpu.dma_semaphore, #tpu.memory_space<semaphore_mem>> -> memref<!tpu.dma_semaphore, #tpu.memory_space<semaphore_mem>>
    tpu.enqueue_dma source(%35 : memref<1x128xf32, #tpu.memory_space<any>>) target(%36 : memref<1x128xf32, #tpu.memory_space<vmem>>) target_semaphore(%38 : memref<!tpu.dma_semaphore, #tpu.memory_space<semaphore_mem>>)
    %c5_i32 = arith.constant 5 : i32
    %39 = arith.addi %3, %c5_i32 : i32
    %40 = arith.index_cast %39 : i32 to index
    %41 = memref.load %arg2[%40] : memref<16xi32, #tpu.memory_space<smem>>
    %c0_i32_16 = arith.constant 0 : i32
    %c0_i32_17 = arith.constant 0 : i32
    %42 = tpu.memref_slice %arg3[%41, %c0_i32_17] : memref<32x128xf32, #tpu.memory_space<any>> -> memref<1x128xf32, #tpu.memory_space<any>>
    %c0_i32_18 = arith.constant 0 : i32
    %43 = tpu.memref_slice %arg8[%c5_i32, %c0_i32_18] : memref<8x128xf32, #tpu.memory_space<vmem>> -> memref<1x128xf32, #tpu.memory_space<vmem>>
    %44 = tpu.memref_slice %arg9[%c0_i32_16] : memref<1x!tpu.dma_semaphore, #tpu.memory_space<semaphore_mem>> -> memref<1x!tpu.dma_semaphore, #tpu.memory_space<semaphore_mem>>
    %45 = tpu.memref_squeeze %44 : memref<1x!tpu.dma_semaphore, #tpu.memory_space<semaphore_mem>> -> memref<!tpu.dma_semaphore, #tpu.memory_space<semaphore_mem>>
    tpu.enqueue_dma source(%42 : memref<1x128xf32, #tpu.memory_space<any>>) target(%43 : memref<1x128xf32, #tpu.memory_space<vmem>>) target_semaphore(%45 : memref<!tpu.dma_semaphore, #tpu.memory_space<semaphore_mem>>)
    %c6_i32 = arith.constant 6 : i32
    %46 = arith.addi %3, %c6_i32 : i32
    %47 = arith.index_cast %46 : i32 to index
    %48 = memref.load %arg2[%47] : memref<16xi32, #tpu.memory_space<smem>>
    %c0_i32_19 = arith.constant 0 : i32
    %c0_i32_20 = arith.constant 0 : i32
    %49 = tpu.memref_slice %arg3[%48, %c0_i32_20] : memref<32x128xf32, #tpu.memory_space<any>> -> memref<1x128xf32, #tpu.memory_space<any>>
    %c0_i32_21 = arith.constant 0 : i32
    %50 = tpu.memref_slice %arg8[%c6_i32, %c0_i32_21] : memref<8x128xf32, #tpu.memory_space<vmem>> -> memref<1x128xf32, #tpu.memory_space<vmem>>
    %51 = tpu.memref_slice %arg9[%c0_i32_19] : memref<1x!tpu.dma_semaphore, #tpu.memory_space<semaphore_mem>> -> memref<1x!tpu.dma_semaphore, #tpu.memory_space<semaphore_mem>>
    %52 = tpu.memref_squeeze %51 : memref<1x!tpu.dma_semaphore, #tpu.memory_space<semaphore_mem>> -> memref<!tpu.dma_semaphore, #tpu.memory_space<semaphore_mem>>
    tpu.enqueue_dma source(%49 : memref<1x128xf32, #tpu.memory_space<any>>) target(%50 : memref<1x128xf32, #tpu.memory_space<vmem>>) target_semaphore(%52 : memref<!tpu.dma_semaphore, #tpu.memory_space<semaphore_mem>>)
    %c7_i32 = arith.constant 7 : i32
    %53 = arith.addi %3, %c7_i32 : i32
    %54 = arith.index_cast %53 : i32 to index
    %55 = memref.load %arg2[%54] : memref<16xi32, #tpu.memory_space<smem>>
    %c0_i32_22 = arith.constant 0 : i32
    %c0_i32_23 = arith.constant 0 : i32
    %56 = tpu.memref_slice %arg3[%55, %c0_i32_23] : memref<32x128xf32, #tpu.memory_space<any>> -> memref<1x128xf32, #tpu.memory_space<any>>
    %c0_i32_24 = arith.constant 0 : i32
    %57 = tpu.memref_slice %arg8[%c7_i32, %c0_i32_24] : memref<8x128xf32, #tpu.memory_space<vmem>> -> memref<1x128xf32, #tpu.memory_space<vmem>>
    %58 = tpu.memref_slice %arg9[%c0_i32_22] : memref<1x!tpu.dma_semaphore, #tpu.memory_space<semaphore_mem>> -> memref<1x!tpu.dma_semaphore, #tpu.memory_space<semaphore_mem>>
    %59 = tpu.memref_squeeze %58 : memref<1x!tpu.dma_semaphore, #tpu.memory_space<semaphore_mem>> -> memref<!tpu.dma_semaphore, #tpu.memory_space<semaphore_mem>>
    tpu.enqueue_dma source(%56 : memref<1x128xf32, #tpu.memory_space<any>>) target(%57 : memref<1x128xf32, #tpu.memory_space<vmem>>) target_semaphore(%59 : memref<!tpu.dma_semaphore, #tpu.memory_space<semaphore_mem>>)
    %c8_i32_25 = arith.constant 8 : i32
    %c0 = arith.constant 0 : index
    %c0_26 = arith.constant 0 : index
    %c0_27 = arith.constant 0 : index
    %60 = vector.load %arg5[%c0, %c0_26, %c0_27] : memref<1x8x1xi32, #tpu.memory_space<vmem>>, vector<1x8x1xi32>
    %61 = vector.shape_cast %60 : vector<1x8x1xi32> to vector<8x1xi32>
    %c0_28 = arith.constant 0 : index
    %c0_29 = arith.constant 0 : index
    %62 = vector.load %arg4[%c0_28, %c0_29] : memref<3x128xf32, #tpu.memory_space<vmem>>, vector<3x128xf32>
    %c0_i32_30 = arith.constant 0 : i32
    %63 = vector.broadcast %c0_i32_30 : i32 to vector<8x1xi32>
    %64 = arith.cmpi eq, %61, %63 : vector<8x1xi32>
    %65 = vector.extract_strided_slice %62 {offsets = [0, 0], sizes = [1, 128], strides = [1, 1]} : vector<3x128xf32> to vector<1x128xf32>
    %c1_i32_31 = arith.constant 1 : i32
    %66 = vector.broadcast %c1_i32_31 : i32 to vector<8x1xi32>
    %67 = arith.cmpi eq, %61, %66 : vector<8x1xi32>
    %68 = vector.extract_strided_slice %62 {offsets = [1, 0], sizes = [1, 128], strides = [1, 1]} : vector<3x128xf32> to vector<1x128xf32>
    %69 = vector.extract_strided_slice %62 {offsets = [2, 0], sizes = [1, 128], strides = [1, 1]} : vector<3x128xf32> to vector<1x128xf32>
    %70 = vector.shape_cast %67 : vector<8x1xi1> to vector<8x1xi1>
    %71 = vector.broadcast %70 : vector<8x1xi1> to vector<8x128xi1>
    %72 = vector.shape_cast %68 : vector<1x128xf32> to vector<1x128xf32>
    %73 = vector.broadcast %72 : vector<1x128xf32> to vector<8x128xf32>
    %74 = vector.shape_cast %69 : vector<1x128xf32> to vector<1x128xf32>
    %75 = vector.broadcast %74 : vector<1x128xf32> to vector<8x128xf32>
    %76 = arith.select %71, %73, %75 : vector<8x128xi1>, vector<8x128xf32>
    %77 = vector.shape_cast %64 : vector<8x1xi1> to vector<8x1xi1>
    %78 = vector.broadcast %77 : vector<8x1xi1> to vector<8x128xi1>
    %79 = vector.shape_cast %65 : vector<1x128xf32> to vector<1x128xf32>
    %80 = vector.broadcast %79 : vector<1x128xf32> to vector<8x128xf32>
    %81 = arith.select %78, %80, %76 : vector<8x128xi1>, vector<8x128xf32>
    %c0_32 = arith.constant 0 : index
    %c0_33 = arith.constant 0 : index
    %82 = vector.load %arg6[%c0_32, %c0_33] : memref<8x128xf32, #tpu.memory_space<vmem>>, vector<8x128xf32>
    %83 = arith.addf %81, %82 : vector<8x128xf32>
    %c0_i32_34 = arith.constant 0 : i32
    %c0_i32_35 = arith.constant 0 : i32
    %c0_i32_36 = arith.constant 0 : i32
    %84 = tpu.memref_slice %arg3[%c0_i32_35, %c0_i32_36] : memref<32x128xf32, #tpu.memory_space<any>> -> memref<8x128xf32, #tpu.memory_space<any>>
    %85 = tpu.memref_slice %arg9[%c0_i32_34] : memref<1x!tpu.dma_semaphore, #tpu.memory_space<semaphore_mem>> -> memref<1x!tpu.dma_semaphore, #tpu.memory_space<semaphore_mem>>
    %86 = tpu.memref_squeeze %85 : memref<1x!tpu.dma_semaphore, #tpu.memory_space<semaphore_mem>> -> memref<!tpu.dma_semaphore, #tpu.memory_space<semaphore_mem>>
    tpu.wait_dma2 semaphore(%86 : memref<!tpu.dma_semaphore, #tpu.memory_space<semaphore_mem>>) src(%84 : memref<8x128xf32, #tpu.memory_space<any>>) dst(%arg8 : memref<8x128xf32, #tpu.memory_space<vmem>>)
    %c0_37 = arith.constant 0 : index
    %c0_38 = arith.constant 0 : index
    %87 = vector.load %arg8[%c0_37, %c0_38] : memref<8x128xf32, #tpu.memory_space<vmem>>, vector<8x128xf32>
    %88 = arith.addf %87, %83 : vector<8x128xf32>
    %c0_39 = arith.constant 0 : index
    %c0_40 = arith.constant 0 : index
    %c0_41 = arith.constant 0 : index
    %89 = vector.load %arg7[%c0_39, %c0_40, %c0_41] : memref<1x8x128xf32, #tpu.memory_space<vmem>>, vector<1x8x128xf32>
    %90 = vector.shape_cast %89 : vector<1x8x128xf32> to vector<8x128xf32>
    %91 = vector.shape_cast %88 : vector<8x128xf32> to vector<1x8x128xf32>
    tpu.vector_store %arg7[%c0_39, %c0_40, %c0_41], %91 {strides = array<i32>} : memref<1x8x128xf32, #tpu.memory_space<vmem>>, vector<1x8x128xf32>,
    return
  }
  func.func @transform_1(%arg0: i32, %arg1: i32, %arg2: memref<16xi32, #tpu.memory_space<smem>>) -> (i32, i32) {
    %c0_i32 = arith.constant 0 : i32
    %c0_i32_0 = arith.constant 0 : i32
    %c0_i32_1 = arith.constant 0 : i32
    return %c0_i32, %c0_i32_0 : i32, i32
  }
  func.func @transform_2(%arg0: i32, %arg1: i32, %arg2: memref<16xi32, #tpu.memory_space<smem>>) -> (i32, i32, i32) {
    %c0_i32 = arith.constant 0 : i32
    %c0_i32_0 = arith.constant 0 : i32
    return %arg1, %arg0, %c0_i32 : i32, i32, i32
  }
  func.func @transform_3(%arg0: i32, %arg1: i32, %arg2: memref<16xi32, #tpu.memory_space<smem>>) -> (i32, i32) {
    %c0_i32 = arith.constant 0 : i32
    %c0_i32_0 = arith.constant 0 : i32
    return %arg0, %c0_i32 : i32, i32
  }
  func.func @transform_4(%arg0: i32, %arg1: i32, %arg2: memref<16xi32, #tpu.memory_space<smem>>) -> (i32, i32, i32) {
    %c0_i32 = arith.constant 0 : i32
    %c0_i32_0 = arith.constant 0 : i32
    return %arg1, %arg0, %c0_i32 : i32, i32, i32
  }
}

</mosaic_0001>

<bundles_post_ra>
// kernel: tpu_custom_call.1
= control target key start
LH: loop header
LB: loop body
LE: loop exit
PB: predicated region body
PF: predicated region fallthrough
CT: control target
= control target key end

     0   :  { %s1139_s0 = inlined_call_operand.vmem [shape: s32[16], index: 0, kind: input, shape index: {}]   ;;  %s1140_s1 = inlined_call_operand.hbm [shape: f32[32,128], index: 1, kind: input, shape index: {}]   ;;  %s1141_s2 = inlined_call_operand.vmem [shape: f32[3,128], index: 2, kind: input, shape index: {}]   ;;  %s1142_s3 = inlined_call_operand.vmem [shape: s32[2,8,1], index: 3, kind: input, shape index: {}]   ;;  %s1143_s4 = inlined_call_operand.vmem [shape: f32[8,128], index: 4, kind: input, shape index: {}]   ;;  %s1144_s5 = inlined_call_operand.hbm [shape: f32[2,8,128], index: 5, kind: output, shape index: {}]  }
   0x1   :  { %1150 = sst [smem:[#allocation34_spill]] %s1142_s3  ;;  %s10_s20 = sshll.u32 %s1139_s0, 4  ;;  %s11_s20 = int_to_ptr.vmem [resolvable:$true] %s10_s20 }
   0x2   :  { %s592_s21 = scalar_lea.vmem %s11_s20, 16  ;;  %p597_p1 = scmp.lt.s32.totalorder %s11_s20, %s11_s20 }
   0x3   :  { %p593_p0 = scmp.ne.s32.totalorder %s11_s20, %s592_s21  ;;  %p598_p2 = scmp.lt.s32.totalorder %s592_s21, %s592_s21 }
   0x5   :  { %p599_p3 = por %p598_p2, %p597_p1 }
   0x7   :  { %p600_p4 = pnand %p599_p3, %p593_p0 }
   0x9   :  { %603 = shalt.err (!%p600_p4)  }
   0xa   :  { %s862_s22 = smov [#allocation5]  }
   0xb   :  { %13 = dma.vmem_to_smem %s11_s20, 16, %s862_s22, [#allocation4] }
   0xc   :  { %830 = dma.done.wait [#allocation4], 16 }
   0xd   :  { %831 = vsyncadd [#allocation4], 4294967280 }
   0xe   :  { %15 = sfence }
   0xf   :  { %16 = vsyncpa [#allocation7], 0 }
  0x10   :  { %18 = vsyncpa [#allocation7 + $0x1], 0  ;;  %s906_s23 = smov 0   ;;  %s908_s24 = smov 0  }
  0x11   :  { %s910_s0 = smov 0   ;;  %s912_s25 = smov 0  }
  0x12   :  { %s914_s26 = smov 0   ;;  %s916_s27 = smov 0  }
  0x13 LB: > { %1151 = sst [smem:[#allocation29_spill]] %s848_s0  ;;  %s504_s28 = sadd.s32 4294967295, %s860_s27   ;;  %s860_s27 = sphi %s916_s27, %s24_s27   ;;  %s856_s26 = sphi %s914_s26, %s1164_s26   ;;  %s852_s25 = sphi %s912_s25, %s1163_s25   ;;  %s848_s0 = sphi %s910_s0, %s1162_s0   ;;  %s844_s24 = sphi %s908_s24, %s1166_s24   ;;  %s840_s23 = sphi %s906_s23, %s1165_s23  }
  0x14   : > { %1152 = sst [smem:[#allocation30_spill]] %s856_s26  ;;  %s505_s29 = sadd.s32 4294967294, %s860_s27  }
  0x15   : > { %s33_s30 = sadd.s32 1, %s856_s26  ;;  %s120_s6 = sadd.s32 1, %s848_s0 }
  0x16   : > { %p34_p5 = scmp.ge.s32.totalorder %s33_s30, 2  ;;  %p130_p6 = scmp.ne.s32.totalorder %s848_s0, %s844_s24 }
  0x17   : > { %p131_p7 = scmp.eq.s32.totalorder %s504_s28, 1  ;;  %p136_p8 = scmp.ne.s32.totalorder %s844_s24, %s840_s23 }
  0x18   : > { %s1168_s30 = smov (%p34_p5, %s33_s30), 0  ;;  %p137_p10 = scmp.eq.s32.totalorder %s505_s29, 1 }
  0x19   : > { %1153 = sst [smem:[#allocation31_spill]] %s1168_s30  ;;  %p946_p9 = por %p131_p7, %p130_p6 }
  0x1a   : > { %s115_s8 = ssub.s32 %s856_s26, %s1168_s30  ;;  %p509_p11 = scmp.ge.s32.totalorder %s860_s27, 1 }
  0x1b   : > { %p118_p12 = scmp.eq.s32.totalorder %s115_s8, 0  ;;  %p953_p13 = por %p137_p10, %p136_p8 }
  0x1c   : > { %p175_p0 = scmp.lt.s32.totalorder %s860_s27, 3 }
  0x1d   : > { %s1155_s9 = scalar_select %p953_p13, 1, 0 }
  0x1e   : > { %s959_s10 = scalar_select %p118_p12, %s848_s0, %s120_s6  }
  0x1f   : > { %1156 = sst [smem:[#allocation32_spill]] %s1155_s9  ;;  %p176_p1 = pnand %p509_p11, %p175_p0 }
  0x20   : > { %1157 = sst [smem:[#allocation33_spill]] %s959_s10  ;;  %p205_p2 = scmp.lt.s32.totalorder (!%p176_p1), %s852_s25, 1 }
  0x21   : > { %179 = sbr.rel (%p176_p1) target bundleno = 238 (0xee), region = 32  ;;  %s1145_s11 = sand.u32 (!%p176_p1), 1, %s844_s24  }
  0x22   : > { %s965_s12 = sshll.u32 (!%p176_p1), %s1145_s11, 3  ;;  %s968_s13 = sshll.u32 (!%p176_p1), %s852_s25, 3 }
  0x23   : > { %s219_s15 = sld [smem:[#allocation5 + %s968_s13]] (!%p176_p1)  ;;  %s864_s20 = smov (!%p176_p1), [#allocation2]  }
  0x24   : > { %s1158_s3 = sld [smem:[#allocation34_spill]] (!%p176_p1)  ;;  %s229_s21 = sshll.u32 (!%p176_p1), %s864_s20, 4  ;;  %s975_s21 = int_to_ptr.vmem [resolvable:$true] %s229_s21 }
  0x25   : > { %s233_s22 = sadd.s32 (!%p176_p1), 1, %s968_s13  ;;  %s865_s29 = smov (!%p176_p1), [#allocation2 + $0x1]  }
  0x26   : > { %v863_v0 = vmov 0   ;;  %s206_s14 = scalar_select %p205_p2, %s852_s25, 1 }
  0x27   : > { %591 = vset.pattern.permute.xlu0 %v863_v0  ;;  %s978_s28 = sld [smem:[#allocation5 + %s233_s22]]  ;;  %s245_s6 = sshll.u32 %s865_s29, 4  ;;  %s981_s6 = int_to_ptr.vmem [resolvable:$true] %s245_s6 }
  0x28   : > { %s511_s16 = sshll.u32 %s206_s14, 3  ;;  %s249_s8 = sadd.s32 2, %s968_s13 }
  0x29   : > { %s513_s14 = sshll.u32 %s219_s15, 4 }
  0x2a   : > { %s211_s19 = scalar_lea.vmem %s1158_s3, %s511_s16  ;;  %s221_s18 = scalar_lea.hbm %s1140_s1, %s513_s14 }
  0x2b   : > { %v345_v1 = vld [vmem:[%s211_s19] sm:$0xff]  ;;  %s986_s19 = sld [smem:[#allocation5 + %s249_s8]]  ;;  %s604_s20 = scalar_lea.hbm %s221_s18, 16 }
  0x2c   : > { %vm348_vm0 = vcmp.eq.s32.totalorder %v345_v1, 1  ;;  %vm347_vm1 = vcmp.eq.s32.totalorder %v345_v1, 0  ;;  %p605_p3 = scmp.ne.s32.totalorder %s221_s18, %s604_s20  ;;  %s991_s3 = scalar_lea.hbm %s1140_s1, 512 }
  0x2d   : > { %v349_v2 = vsel %vm348_vm0, 1, %v863_v0  ;;  %v363_v3 = vsel %vm347_vm1, 1, %v863_v0  ;;  %p607_p4 = scmp.lt.s32.totalorder %s221_s18, %s1140_s1  ;;  %p608_p5 = scmp.lt.s32.totalorder %s991_s3, %s604_s20 }
  0x2e   : > { %351 = vperm.xlu0 %591, %v349_v2  }
  0x2f   : > { %p609_p6 = por %p608_p5, %p607_p4 }
  0x31   : > { %p610_p7 = pnand %p609_p6, %p605_p3 }
  0x33   : > { %613 = shalt.err (!%p610_p7)  }
  0x34   : > { %s614_s15 = scalar_lea.vmem %s975_s21, 16  ;;  %s1000_s8 = scalar_lea.vmem %s975_s21, 128 }
  0x35   : > { %p615_p8 = scmp.ne.s32.totalorder %s975_s21, %s614_s15  ;;  %p619_p10 = scmp.lt.s32.totalorder %s975_s21, %s975_s21 }
  0x36   : > { %p620_p11 = scmp.lt.s32.totalorder %s1000_s8, %s614_s15 }
  0x38   : > { %p621_p12 = por %p620_p11, %p619_p10 }
  0x3a   : > { %p622_p0 = pnand %p621_p12, %p615_p8 }
  0x3c   : > { %625 = shalt.err (!%p622_p0)  }
  0x3d   : > { %232 = dma.hbm_to_vmem [thread:$0]  %s221_s18, 16, %s975_s21, [#allocation3]  ;;  %365 = vperm.xlu0 %591, %v363_v3  }
  0x3e   : > { %s265_s30 = sadd.s32 3, %s968_s13  ;;  %s514_s11 = sshll.u32 %s978_s28, 4 }
  0x3f   : > { %s866_s14 = smov [#allocation2 + $0x2]   ;;  %s236_s22 = scalar_lea.hbm %s1140_s1, %s514_s11 }
  0x40   : > { %s261_s16 = sshll.u32 %s866_s14, 4  ;;  %s626_s29 = scalar_lea.hbm %s236_s22, 16  ;;  %s1011_s16 = int_to_ptr.vmem [resolvable:$true] %s261_s16 }
  0x41   : > { %p627_p1 = scmp.ne.s32.totalorder %s236_s22, %s626_s29  ;;  %p629_p2 = scmp.lt.s32.totalorder %s236_s22, %s1140_s1 }
  0x42   : > { %p630_p3 = scmp.lt.s32.totalorder %s991_s3, %s626_s29 }
  0x44   : > { %p631_p4 = por %p630_p3, %p629_p2 }
  0x46   : > { %p632_p5 = pnand %p631_p4, %p627_p1 }
  0x48   : > { %635 = shalt.err (!%p632_p5)  }
  0x49   : > { %s636_s28 = scalar_lea.vmem %s981_s6, 16  ;;  %p641_p7 = scmp.lt.s32.totalorder %s981_s6, %s975_s21 }
  0x4a   : > { %p637_p6 = scmp.ne.s32.totalorder %s981_s6, %s636_s28  ;;  %p642_p8 = scmp.lt.s32.totalorder %s1000_s8, %s636_s28 }
  0x4c   : > { %p643_p10 = por %p642_p8, %p641_p7 }
  0x4e   : > { %p644_p11 = pnand %p643_p10, %p637_p6 }
  0x50   : > { %647 = shalt.err (!%p644_p11)  }
  0x51   : > { %248 = dma.hbm_to_vmem [thread:$0]  %s236_s22, 16, %s981_s6, [#allocation3] }
  0x52   : > { %s515_s26 = sshll.u32 %s986_s19, 4  ;;  %s266_s18 = sld [smem:[#allocation5 + %s265_s30]] }
  0x53   : > { %s252_s17 = scalar_lea.hbm %s1140_s1, %s515_s26 }
  0x54   : > { %s648_s20 = scalar_lea.hbm %s252_s17, 16  ;;  %p651_p0 = scmp.lt.s32.totalorder %s252_s17, %s1140_s1 }
  0x55   : > { %p649_p12 = scmp.ne.s32.totalorder %s252_s17, %s648_s20  ;;  %p652_p1 = scmp.lt.s32.totalorder %s991_s3, %s648_s20 }
  0x57   : > { %p653_p2 = por %p652_p1, %p651_p0 }
  0x59   : > { %p654_p3 = pnand %p653_p2, %p649_p12 }
  0x5b   : > { %657 = shalt.err (!%p654_p3)  }
  0x5c   : > { %s658_s6 = scalar_lea.vmem %s1011_s16, 16  ;;  %p663_p5 = scmp.lt.s32.totalorder %s1011_s16, %s975_s21 }
  0x5d   : > { %p659_p4 = scmp.ne.s32.totalorder %s1011_s16, %s658_s6  ;;  %p664_p6 = scmp.lt.s32.totalorder %s1000_s8, %s658_s6 }
  0x5f   : > { %p665_p7 = por %p664_p6, %p663_p5 }
  0x61   : > { %p666_p8 = pnand %p665_p7, %p659_p4 }
  0x63   : > { %669 = shalt.err (!%p666_p8)  }
  0x64   : > { %264 = dma.hbm_to_vmem [thread:$0]  %s252_s17, 16, %s1011_s16, [#allocation3] }
  0x65   : > { %s867_s19 = smov [#allocation2 + $0x3]   ;;  %s281_s22 = sadd.s32 4, %s968_s13 }
  0x66   : > { %s277_s30 = sshll.u32 %s867_s19, 4  ;;  %s282_s28 = sld [smem:[#allocation5 + %s281_s22]]  ;;  %s278_s30 = int_to_ptr.vmem [resolvable:$true] %s277_s30 }
  0x67   : > { %s297_s26 = sadd.s32 5, %s968_s13  ;;  %s516_s11 = sshll.u32 %s266_s18, 4 }
  0x68   : > { %s868_s14 = smov [#allocation2 + $0x4]   ;;  %s268_s6 = scalar_lea.hbm %s1140_s1, %s516_s11 }
  0x69   : > { %s293_s20 = sshll.u32 %s868_s14, 4  ;;  %s670_s10 = scalar_lea.hbm %s268_s6, 16  ;;  %s1042_s20 = int_to_ptr.vmem [resolvable:$true] %s293_s20 }
  0x6a   : > { %p671_p10 = scmp.ne.s32.totalorder %s268_s6, %s670_s10  ;;  %p673_p11 = scmp.lt.s32.totalorder %s268_s6, %s1140_s1 }
  0x6b   : > { %p674_p12 = scmp.lt.s32.totalorder %s991_s3, %s670_s10 }
  0x6d   : > { %p675_p0 = por %p674_p12, %p673_p11 }
  0x6f   : > { %p676_p1 = pnand %p675_p0, %p671_p10 }
  0x71   : > { %679 = shalt.err (!%p676_p1)  }
  0x72   : > { %s680_s16 = scalar_lea.vmem %s278_s30, 16  ;;  %p685_p3 = scmp.lt.s32.totalorder %s278_s30, %s975_s21 }
  0x73   : > { %p681_p2 = scmp.ne.s32.totalorder %s278_s30, %s680_s16  ;;  %p686_p4 = scmp.lt.s32.totalorder %s1000_s8, %s680_s16 }
  0x75   : > { %p687_p5 = por %p686_p4, %p685_p3 }
  0x77   : > { %p688_p6 = pnand %p687_p5, %p681_p2 }
  0x79   : > { %691 = shalt.err (!%p688_p6)  }
  0x7a   : > { %280 = dma.hbm_to_vmem [thread:$0]  %s268_s6, 16, %s278_s30, [#allocation3] }
  0x7b   : > { %s298_s18 = sld [smem:[#allocation5 + %s297_s26]]  ;;  %s517_s17 = sshll.u32 %s282_s28, 4 }
  0x7c   : > { %s284_s9 = scalar_lea.hbm %s1140_s1, %s517_s17  ;;  %s869_s10 = smov [#allocation2 + $0x5]  }
  0x7d   : > { %s309_s22 = sshll.u32 %s869_s10, 4  ;;  %s692_s11 = scalar_lea.hbm %s284_s9, 16  ;;  %s310_s22 = int_to_ptr.vmem [resolvable:$true] %s309_s22 }
  0x7e   : > { %p693_p7 = scmp.ne.s32.totalorder %s284_s9, %s692_s11  ;;  %p695_p8 = scmp.lt.s32.totalorder %s284_s9, %s1140_s1 }
  0x7f   : > { %p696_p10 = scmp.lt.s32.totalorder %s991_s3, %s692_s11 }
  0x81   : > { %p697_p11 = por %p696_p10, %p695_p8 }
  0x83   : > { %p698_p12 = pnand %p697_p11, %p693_p7 }
  0x85   : > { %701 = shalt.err (!%p698_p12)  }
  0x86   : > { %s702_s30 = scalar_lea.vmem %s1042_s20, 16  ;;  %p707_p1 = scmp.lt.s32.totalorder %s1042_s20, %s975_s21 }
  0x87   : > { %p703_p0 = scmp.ne.s32.totalorder %s1042_s20, %s702_s30  ;;  %p708_p2 = scmp.lt.s32.totalorder %s1000_s8, %s702_s30 }
  0x89   : > { %p709_p3 = por %p708_p2, %p707_p1 }
  0x8b   : > { %p710_p4 = pnand %p709_p3, %p703_p0 }
  0x8d   : > { %713 = shalt.err (!%p710_p4)  }
  0x8e   : > { %296 = dma.hbm_to_vmem [thread:$0]  %s284_s9, 16, %s1042_s20, [#allocation3] }
  0x8f   : > { %s313_s28 = sadd.s32 6, %s968_s13  ;;  %s518_s15 = sshll.u32 %s298_s18, 4 }
  0x90   : > { %s314_s26 = sld [smem:[#allocation5 + %s313_s28]]  ;;  %s870_s6 = smov [#allocation2 + $0x6]  }
  0x91   : > { %s325_s16 = sshll.u32 %s870_s6, 4  ;;  %s300_s0 = scalar_lea.hbm %s1140_s1, %s518_s15  ;;  %s326_s16 = int_to_ptr.vmem [resolvable:$true] %s325_s16 }
  0x92   : > { %s329_s10 = sadd.s32 7, %s968_s13  ;;  %s714_s11 = scalar_lea.hbm %s300_s0, 16 }
  0x93   : > { %p715_p5 = scmp.ne.s32.totalorder %s300_s0, %s714_s11  ;;  %p717_p6 = scmp.lt.s32.totalorder %s300_s0, %s1140_s1 }
  0x94   : > { %p718_p7 = scmp.lt.s32.totalorder %s991_s3, %s714_s11 }
  0x96   : > { %p719_p8 = por %p718_p7, %p717_p6 }
  0x98   : > { %p720_p10 = pnand %p719_p8, %p715_p5 }
  0x9a   : > { %723 = shalt.err (!%p720_p10)  }
  0x9b   : > { %s724_s20 = scalar_lea.vmem %s310_s22, 16  ;;  %p729_p12 = scmp.lt.s32.totalorder %s310_s22, %s975_s21 }
  0x9c   : > { %p725_p11 = scmp.ne.s32.totalorder %s310_s22, %s724_s20  ;;  %p730_p0 = scmp.lt.s32.totalorder %s1000_s8, %s724_s20 }
  0x9e   : > { %p731_p1 = por %p730_p0, %p729_p12 }
  0xa0   : > { %p732_p2 = pnand %p731_p1, %p725_p11 }
  0xa2   : > { %735 = shalt.err (!%p732_p2)  }
  0xa3   : > { %312 = dma.hbm_to_vmem [thread:$0]  %s300_s0, 16, %s310_s22, [#allocation3] }
  0xa4   : > { %s330_s13 = sld [smem:[#allocation5 + %s329_s10]]  ;;  %s519_s18 = sshll.u32 %s314_s26, 4 }
  0xa5   : > { %s871_s9 = smov [#allocation2 + $0x7]   ;;  %s316_s6 = scalar_lea.hbm %s1140_s1, %s519_s18 }
  0xa6   : > { %s341_s30 = sshll.u32 %s871_s9, 4  ;;  %s736_s17 = scalar_lea.hbm %s316_s6, 16  ;;  %s342_s30 = int_to_ptr.vmem [resolvable:$true] %s341_s30 }
  0xa7   : > { %p737_p3 = scmp.ne.s32.totalorder %s316_s6, %s736_s17  ;;  %p739_p4 = scmp.lt.s32.totalorder %s316_s6, %s1140_s1 }
  0xa8   : > { %p740_p5 = scmp.lt.s32.totalorder %s991_s3, %s736_s17 }
  0xaa   : > { %p741_p6 = por %p740_p5, %p739_p4 }
  0xac   : > { %p742_p7 = pnand %p741_p6, %p737_p3 }
  0xae   : > { %745 = shalt.err (!%p742_p7)  }
  0xaf   : > { %s746_s22 = scalar_lea.vmem %s326_s16, 16  ;;  %p751_p10 = scmp.lt.s32.totalorder %s326_s16, %s975_s21 }
  0xb0   : > { %p747_p8 = scmp.ne.s32.totalorder %s326_s16, %s746_s22  ;;  %p752_p11 = scmp.lt.s32.totalorder %s1000_s8, %s746_s22 }
  0xb2   : > { %p753_p12 = por %p752_p11, %p751_p10 }
  0xb4   : > { %p754_p0 = pnand %p753_p12, %p747_p8 }
  0xb6   : > { %757 = shalt.err (!%p754_p0)  }
  0xb7   : > { %328 = dma.hbm_to_vmem [thread:$0]  %s316_s6, 16, %s326_s16, [#allocation3] }
  0xb8   : > { %s520_s26 = sshll.u32 %s330_s13, 4 }
  0xb9   : > { %s332_s14 = scalar_lea.hbm %s1140_s1, %s520_s26 }
  0xba   : > { %s758_s29 = scalar_lea.hbm %s332_s14, 16  ;;  %p761_p2 = scmp.lt.s32.totalorder %s332_s14, %s1140_s1 }
  0xbb   : > { %p759_p1 = scmp.ne.s32.totalorder %s332_s14, %s758_s29  ;;  %p762_p3 = scmp.lt.s32.totalorder %s991_s3, %s758_s29 }
  0xbd   : > { %p763_p4 = por %p762_p3, %p761_p2 }
  0xbf   : > { %p764_p5 = pnand %p763_p4, %p759_p1 }
  0xc1   : > { %767 = shalt.err (!%p764_p5)  }
  0xc2   : > { %s768_s9 = scalar_lea.vmem %s342_s30, 16  ;;  %p773_p7 = scmp.lt.s32.totalorder %s342_s30, %s975_s21 }
  0xc3   : > { %p769_p6 = scmp.ne.s32.totalorder %s342_s30, %s768_s9  ;;  %p774_p8 = scmp.lt.s32.totalorder %s1000_s8, %s768_s9 }
  0xc5   : > { %p775_p10 = por %p774_p8, %p773_p7 }
  0xc7   : > { %p776_p11 = pnand %p775_p10, %p769_p6 }
  0xc9   : > { %779 = shalt.err (!%p776_p11)  }
  0xca   : > { %344 = dma.hbm_to_vmem [thread:$0]  %s332_s14, 16, %s342_s30, [#allocation3]  ;;  %v354_v4 = vlaneseq  ;;  %v346_v8 = vld [vmem:[%s1141_s2] sm:$0x7]  ;;  %v352_v10 = vpop.permute.xlu0 %351 }
  0xcb   : > { %vm353_vm2 = vcmp.eq.s32.totalorder %v352_v10, 1  ;;  %v373_v14 = vld [vmem:[%s1143_s4] sm:$0xff]  ;;  %s204_s13 = scalar_lea.vmem [#allocation6], %s965_s12 }
  0xcc   : > { %v355_v5 = vshrl.u32 %v354_v4, 7 }
  0xce   : > { %v356_v6 = vsub.s32 1, %v355_v5  ;;  %v360_v7 = vsub.s32 2, %v355_v5  ;;  %v370_v9 = vsub.s32 0, %v355_v5  ;;  %v366_v15 = vpop.permute.xlu0 %365 }
  0xcf   : > { %vm367_vm3 = vcmp.eq.s32.totalorder %v366_v15, 1 }
  0xd0   : > { %v357_v11 = vrot.slane %v346_v8, %v356_v6  ;;  %v361_v12 = vrot.slane %v346_v8, %v360_v7  ;;  %v371_v13 = vrot.slane %v346_v8, %v370_v9 }
  0xd2   : > { %v362_v16 = vsel %vm353_vm2, %v357_v11, %v361_v12 }
  0xd3   : > { %v372_v17 = vsel %vm367_vm3, %v371_v13, %v362_v16 }
  0xd4   : > { %v374_v18 = vadd.f32 %v373_v14, %v372_v17 }
  0xd5   : > { %832 = dma.done.wait [#allocation3], 128 }
  0xd6   : > { %833 = vsyncadd [#allocation3], 4294967168  ;;  %s522_s30 = sshll.u32 %s852_s25, 7  ;;  %s396_s28 = sshll.u32 %s204_s13, 4  ;;  %v378_v19 = vld [vmem:[#allocation2] sm:$0xff]  ;;  %s397_s28 = int_to_ptr.vmem [resolvable:$true] %s396_s28 }
  0xd7   : > { %v379_v20 = vadd.f32 %v378_v19, %v374_v18  ;;  %s394_s17 = scalar_lea.hbm %s1144_s5, %s522_s30  ;;  %s1159_s19 = sand.u32 1, %s844_s24  }
  0xd8   : > { %s382_s11 = scalar_lea.sflag [#allocation7], %s1159_s19  ;;  %s780_s22 = scalar_lea.vmem %s397_s28, 128 }
  0xd9   : > { %380 = vst [vmem:[%s204_s13] sm:$0xff] %v379_v20  ;;  %p781_p12 = scmp.ne.s32.totalorder %s397_s28, %s780_s22  ;;  %s872_s12 = smov [#allocation6]  }
  0xda   : > { %s784_s26 = sshll.u32 %s872_s12, 4  ;;  %s785_s26 = int_to_ptr.vmem [resolvable:$false] %s784_s26 }
  0xdb   : > { %p782_p0 = pnand %p781_p12, %p946_p9  ;;  %s786_s25 = scalar_lea.vmem %s785_s26, 256 }
  0xdc   : > { %p787_p2 = scmp.lt.s32.totalorder %s397_s28, %s785_s26  ;;  %p788_p3 = scmp.lt.s32.totalorder %s786_s25, %s780_s22 }
  0xdd   : > { %p783_p1 = pneg %p782_p0 }
  0xde   : > { %p789_p4 = por %p788_p3, %p787_p2 }
  0xe0   : > { %p790_p5 = pnand %p789_p4, %p783_p1 }
  0xe2   : > { %793 = shalt.err (!%p790_p5)
}
  0xe3   : > { %s794_s0 = scalar_lea.hbm %s394_s17, 128  ;;  %s798_s29 = scalar_lea.hbm %s1144_s5, 256 }
  0xe4   : > { %p795_p6 = scmp.ne.s32.totalorder %s394_s17, %s794_s0  ;;  %p799_p10 = scmp.lt.s32.totalorder %s394_s17, %s1144_s5 }
  0xe5   : > { %p800_p11 = scmp.lt.s32.totalorder %s798_s29, %s794_s0 }
  0xe6   : > { %p796_p7 = pnand %p795_p6, %p946_p9 }
  0xe7   : > { %p801_p12 = por %p800_p11, %p799_p10 }
  0xe8   : > { %p797_p8 = pneg %p796_p7 }
  0xea   : > { %p802_p0 = pnand %p801_p12, %p797_p8 }
  0xec   : > { %805 = shalt.err (!%p802_p0)
}
  0xed   : > { %526 = dma.vmem_to_hbm [thread:$0]  (%p946_p9), %s397_s28, 128, %s394_s17, %s382_s11  }
  0xee PF: > { %p532_p1 = scmp.ge.s32.totalorder %s860_s27, 2  ;;  %s408_s16 = sand.u32 1, %s840_s23  }
  0xef   : > { %s409_s3 = scalar_lea.sflag [#allocation7], %s408_s16 }
  0xf0   : > { %p529_p2 = pnand %p532_p1, %p953_p13 }
  0xf2   : > { %p530_p3 = pneg %p529_p2 }
  0xf4   : > { %835 = dma.done.wait (%p530_p3), %s409_s3, 128  }
  0xf5   : > { %837 = vsyncadd (%p530_p3), %s409_s3, 4294967168  ;;  %s24_s27 = sadd.s32 1, %s860_s27   ;;  %s1161_s21 = sld [smem:[#allocation29_spill]] }
  0xf6   : > { %p21_p4 = scmp.ge.s32.totalorder %s24_s27, 4   ;;  %s1162_s0 = sld [smem:[#allocation33_spill]] }
  0xf7   : > { %s1163_s25 = sld [smem:[#allocation30_spill]]  ;;  %s1165_s23 = smov %s844_s24 }
  0xf8   : > { %s1164_s26 = sld [smem:[#allocation31_spill]]  ;;  %23 = sbr.rel (!%p21_p4) target bundleno = 19 (0x13), region = 117 }
  0xfb   : > { %s1166_s24 = smov %s1161_s21 }
  0xfd   :  { %414 = vsyncpa [#allocation7], 1 }
  0xfe   :  { %416 = vsyncpa [#allocation7 + $0x1], 1 }
  0xff   :  { %417 = vsyncmov [#allocation3] }
 0x102   :  { %s418_s7 = vpop.sfrf %417 }
 0x103   :  { %p525_p9 = scmp.ne.s32.totalorder %s418_s7, 0 }
 0x105   :  { %422 = shalt.err (%p525_p9)  }

</bundles_post_ra>
